<compile_context>
chip_gen: v6e
topology: v6e:2x2x1
jax: 0.10.0
libtpu: 0.0.40
codegen_flags: <defaults>
</compile_context>

<pallas_src>
import jax
import jax.numpy as jnp
from jax.experimental import pallas as pl
from jax.experimental.pallas import tpu as pltpu


# ----------------------------------------------------------------------------
# Fused kernel: word+pos lookup (one MXU matmul) + char conv/mask/max (VPU)
# ----------------------------------------------------------------------------
def _embedding_kernel(wp_ids_ref, chars_ref, wp_table_ref, taps_ref, bias_ref,
                      out_ref):
    # wp_ids_ref:   [TN, 3] int32  (word id, pos1 id + Vw, pos2 id + Vw + Vp)
    # chars_ref:    [TN, L] int32
    # wp_table_ref: [Vwp, Dwp] f32 block-diagonal (word | pos1 | pos2)
    # taps_ref:     [K, Cout] f32  (W_char[0] folded through each conv tap)
    # bias_ref:     [1, Cout] f32
    # out_ref:      [TN, Dwp + Cout] f32
    tn = wp_ids_ref.shape[0]
    vwp, dwp = wp_table_ref.shape
    L = chars_ref.shape[1]
    K, cout = taps_ref.shape
    T = L + K + 1  # conv1d output length with padding=K, stride=1

    # ---- fused word/pos1/pos2 lookup: ids live in disjoint ranges of the
    #      block-diagonal table, so one one-hot matmul writes word||pos1||pos2.
    ids = wp_ids_ref[...]                                              # [TN, 3]
    iota_v = jax.lax.broadcasted_iota(jnp.int32, (tn, vwp), 1)
    oh_wp = ((iota_v == ids[:, 0:1]) | (iota_v == ids[:, 1:2]) |
             (iota_v == ids[:, 2:3])).astype(jnp.float32)              # [TN, Vwp]
    out_ref[:, :dwp] = jnp.dot(oh_wp, wp_table_ref[...],
                               preferred_element_type=jnp.float32)     # [TN, Dwp]

    # ---- character CNN (reduced to indicator-weighted tap adds; see header)
    ind = (chars_ref[...] == 0).astype(jnp.float32)                    # [TN, L]
    taps_all = taps_ref[...]                                           # [K, Cout]
    taps = [taps_all[k:k + 1, :] for k in range(K)]                    # [1, Cout]
    bias_b = jnp.broadcast_to(bias_ref[...], (tn, cout))               # hoisted

    # Front K-1 time steps are masked to zero by the reference (mask2 = ones),
    # so 0 is always in the max set: start the running max at 0 and skip them.
    run_max = jnp.zeros((tn, cout), jnp.float32)
    for t in range(K - 1, T):
        acc = bias_b
        for k in range(K):
            p = t + k - K              # position in the unpadded input
            if 0 <= p < L:
                acc = acc + ind[:, p:p + 1] * taps[k]
        if t < K - 1 + L:
            # middle of mask2 = (chars != 0): keep only where char id == 0
            j = t - (K - 1)
            acc = acc * ind[:, j:j + 1]
        # back of mask2 = zeros(K-1): no masking
        run_max = jnp.maximum(run_max, acc)

    out_ref[:, dwp:] = jnp.maximum(run_max, 0.0)                       # ReLU


def _round_up(x, m):
    return (x + m - 1) // m * m


# ----------------------------------------------------------------------------
# Full Embedding.forward (word + pos + char), single fused pallas_call
# ----------------------------------------------------------------------------
def embedding_forward(word, pos1, pos2, chars, weights, *, max_tile=512):
    B, S = word.shape
    L = chars.shape[-1]
    W_word = weights["W_word"].astype(jnp.float32)
    W_pos1 = weights["W_pos1"].astype(jnp.float32)
    W_pos2 = weights["W_pos2"].astype(jnp.float32)
    W_char = weights["W_char"].astype(jnp.float32)
    conv_w = weights["conv_w"].astype(jnp.float32)
    conv_b = weights["conv_b"].astype(jnp.float32)

    Vw, Dw = W_word.shape
    Vp, Dp = W_pos1.shape
    K, Cin, Cout = conv_w.shape
    assert K == 3, "reference code only shape-checks for char_window_size == 3"
    Vwp, Dwp = Vw + 2 * Vp, Dw + 2 * Dp
    Dtot = Dwp + Cout

    # Host-side precompute (negligible FLOPs):
    # block-diagonal word/pos table -> one fused lookup matmul in-kernel
    wp_table = jnp.zeros((Vwp, Dwp), jnp.float32)
    wp_table = wp_table.at[:Vw, :Dw].set(W_word)
    wp_table = wp_table.at[Vw:Vw + Vp, Dw:Dw + Dp].set(W_pos1)
    wp_table = wp_table.at[Vw + Vp:, Dw + Dp:].set(W_pos2)
    # Only W_char[0] survives the reference's first mask -> fold it into taps.
    taps = jnp.einsum("c,kco->ko", W_char[0], conv_w)                  # [K, Cout]

    N = B * S
    wp_ids = jnp.stack(
        [word.reshape(-1).astype(jnp.int32),
         pos1.reshape(-1).astype(jnp.int32) + Vw,
         pos2.reshape(-1).astype(jnp.int32) + Vw + Vp], axis=1)        # [N, 3]
    chars_f = chars.reshape(N, L).astype(jnp.int32)

    # Token tile: as large as possible (<= max_tile); pad N to a tile multiple.
    tile = min(max_tile, _round_up(N, 8))
    Npad = _round_up(N, tile)
    if Npad != N:
        wp_ids = jnp.pad(wp_ids, ((0, Npad - N), (0, 0)))
        chars_f = jnp.pad(chars_f, ((0, Npad - N), (0, 0)))

    out = pl.pallas_call(
        _embedding_kernel,
        out_shape=jax.ShapeDtypeStruct((Npad, Dtot), jnp.float32),
        grid_spec=pltpu.PrefetchScalarGridSpec(
            num_scalar_prefetch=0,
            grid=(Npad // tile,),
            in_specs=[pl.BlockSpec((tile, 3), lambda i: (i, 0)),
                      pl.BlockSpec((tile, L), lambda i: (i, 0)),
                      pl.BlockSpec((Vwp, Dwp), lambda i: (0, 0)),
                      pl.BlockSpec((K, Cout), lambda i: (0, 0)),
                      pl.BlockSpec((1, Cout), lambda i: (0, 0))],
            out_specs=pl.BlockSpec((tile, Dtot), lambda i: (i, 0))),
        compiler_params=pltpu.CompilerParams(
            dimension_semantics=("parallel",)),
    )(wp_ids, chars_f, wp_table, taps, conv_b.reshape(1, Cout))

    return out[:N].reshape(B, S, Dtot)


# ----------------------------------------------------------------------------
# Pure-JAX reference (mirrors the PyTorch forward) for validation.
# ----------------------------------------------------------------------------
def reference_forward(word, pos1, pos2, chars, weights):
    W_word, W_pos1, W_pos2 = weights["W_word"], weights["W_pos1"], weights["W_pos2"]
    W_char, conv_w, conv_b = weights["W_char"], weights["conv_w"], weights["conv_b"]
    B, S, L = chars.shape
    K, cin, cout = conv_w.shape

    word_emb = W_word[word]
    pos_emb = jnp.concatenate([W_pos1[pos1], W_pos2[pos2]], axis=-1)

    cf = chars.reshape(B * S, L)
    mask = cf != 0
    emb = W_char[cf]                                                   # [N, L, Cin]
    emb = jnp.where(mask[:, :, None], 0.0, emb)
    x = jnp.pad(emb, ((0, 0), (K, K), (0, 0)))                          # padding=K
    T = L + K + 1
    out = jnp.zeros((B * S, T, cout), jnp.float32) + conv_b[None, None, :]
    for k in range(K):
        out = out + jnp.einsum("ntc,co->nto", x[:, k:k + T, :], conv_w[k])
    mask2 = jnp.concatenate([jnp.ones((B * S, K - 1), bool), mask,
                             jnp.zeros((B * S, K - 1), bool)], axis=1)  # [N, T]
    out = jnp.where(mask2[:, :, None], 0.0, out)
    char_emb = jnp.maximum(jnp.max(out, axis=1), 0.0).reshape(B, S, -1)
    return jnp.concatenate([word_emb, pos_emb, char_emb], axis=-1)


if __name__ == "__main__":
    # params (module __init__): embed_pos=True, embed_char=True,
    # drop_word=None, drop_char=None  -> dropout branches disabled (identity).
    num_words, word_size = 50, 32
    pos_num, pos_size = 12, 8
    num_chars, char_size = 20, 16       # char_size == conv out_channels
    char_window_size = 3                # K (must be 3 for the reference to shape-check)
    max_word_length = 16                # L
    in_channels = 10                    # fixed in CharacterEmbedding.__init__
    B, S = 2, 8

    key = jax.random.PRNGKey(0)
    k1, k2, k3, k4, k5, k6, k7, k8, k9, k10 = jax.random.split(key, 10)

    # Deterministic parameter init (shapes per the module's __init__).
    W_word = jax.random.normal(k1, (num_words, word_size), jnp.float32)
    xb = (6.0 / (pos_num + pos_size)) ** 0.5                 # xavier_uniform bound
    W_pos1 = jax.random.uniform(k2, (pos_num, pos_size), jnp.float32, -xb, xb
                                ).at[0].set(0.0)             # padding_idx=0
    W_pos2 = jax.random.uniform(k3, (pos_num, pos_size), jnp.float32, -xb, xb
                                ).at[0].set(0.0)
    W_char = jax.random.normal(k4, (num_chars, in_channels), jnp.float32)
    cb = 1.0 / (in_channels * char_window_size) ** 0.5
    # conv_w stored as [K, Cin, Cout] (transpose of PyTorch's [Cout, Cin, K])
    conv_w = jax.random.uniform(k5, (char_window_size, in_channels, char_size),
                                jnp.float32, -cb, cb)
    conv_b = jax.random.uniform(k6, (char_size,), jnp.float32, -cb, cb)

    weights = dict(W_word=W_word, W_pos1=W_pos1, W_pos2=W_pos2,
                   W_char=W_char, conv_w=conv_w, conv_b=conv_b)

    # Example inputs.
    word = jax.random.randint(k7, (B, S), 0, num_words, jnp.int32)
    pos1 = jax.random.randint(k8, (B, S), 0, pos_num, jnp.int32)
    pos2 = jax.random.randint(k9, (B, S), 0, pos_num, jnp.int32)
    chars = jax.random.randint(k10, (B, S, max_word_length), 0, num_chars, jnp.int32)

    out = embedding_forward(word, pos1, pos2, chars, weights)
    out = jax.block_until_ready(out)

    ref = reference_forward(word, pos1, pos2, chars, weights)
    assert out.shape == (B, S, word_size + 2 * pos_size + char_size), out.shape
    assert jnp.allclose(out, ref, atol=1e-4, rtol=1e-4), \
        float(jnp.max(jnp.abs(out - ref)))

    print("KERNEL_OK")
</pallas_src>

<mosaic_0001>
module attributes {stable_mosaic.version = 11 : i64} {
  func.func @_embedding_kernel(%arg0: i32, %arg1: memref<16x3xi32, #tpu.memory_space<vmem>>, %arg2: memref<16x16xi32, #tpu.memory_space<vmem>>, %arg3: memref<74x48xf32, #tpu.memory_space<vmem>>, %arg4: memref<3x16xf32, #tpu.memory_space<vmem>>, %arg5: memref<1x16xf32, #tpu.memory_space<vmem>>, %arg6: memref<16x64xf32, #tpu.memory_space<vmem>>) attributes {dimension_semantics = [#tpu.dimension_semantics<parallel>], iteration_bounds = array<i64: 1>, scalar_prefetch = 0 : i64, scratch_operands = 0 : i64, tpu.core_type = #tpu.core_type<tc>, window_params = [{transform_indices = @transform_0, window_bounds = array<i64: 16, 3>}, {transform_indices = @transform_1, window_bounds = array<i64: 16, 16>}, {pipeline_mode = #tpu.pipeline_mode<synchronous>, transform_indices = @transform_2, window_bounds = array<i64: 74, 48>}, {pipeline_mode = #tpu.pipeline_mode<synchronous>, transform_indices = @transform_3, window_bounds = array<i64: 3, 16>}, {pipeline_mode = #tpu.pipeline_mode<synchronous>, transform_indices = @transform_4, window_bounds = array<i64: 1, 16>}, {transform_indices = @transform_5, window_bounds = array<i64: 16, 64>}]} {
    %c0 = arith.constant 0 : index
    %c0_0 = arith.constant 0 : index
    %0 = vector.load %arg1[%c0, %c0_0] : memref<16x3xi32, #tpu.memory_space<vmem>>, vector<16x3xi32>
    %1 = tpu.iota {dimensions = array<i32: 1>} : vector<16x74xi32>
    %2 = vector.extract_strided_slice %0 {offsets = [0, 0], sizes = [16, 1], strides = [1, 1]} : vector<16x3xi32> to vector<16x1xi32>
    %3 = vector.broadcast %2 : vector<16x1xi32> to vector<16x74xi32>
    %4 = arith.cmpi eq, %1, %3 : vector<16x74xi32>
    %5 = vector.extract_strided_slice %0 {offsets = [0, 1], sizes = [16, 1], strides = [1, 1]} : vector<16x3xi32> to vector<16x1xi32>
    %6 = vector.broadcast %5 : vector<16x1xi32> to vector<16x74xi32>
    %7 = arith.cmpi eq, %1, %6 : vector<16x74xi32>
    %8 = arith.ori %4, %7 : vector<16x74xi1>
    %9 = vector.extract_strided_slice %0 {offsets = [0, 2], sizes = [16, 1], strides = [1, 1]} : vector<16x3xi32> to vector<16x1xi32>
    %10 = vector.broadcast %9 : vector<16x1xi32> to vector<16x74xi32>
    %11 = arith.cmpi eq, %1, %10 : vector<16x74xi32>
    %12 = arith.ori %8, %11 : vector<16x74xi1>
    %13 = arith.extui %12 : vector<16x74xi1> to vector<16x74xi32>
    %14 = arith.sitofp %13 : vector<16x74xi32> to vector<16x74xf32>
    %c0_1 = arith.constant 0 : index
    %c0_2 = arith.constant 0 : index
    %15 = vector.load %arg3[%c0_1, %c0_2] : memref<74x48xf32, #tpu.memory_space<vmem>>, vector<74x48xf32>
    %cst = arith.constant dense<0.000000e+00> : vector<16x48xf32>
    %16 = tpu.matmul %14, %15, %cst {dimension_numbers = #tpu.dot_dimension_numbers<[1], [0], [0], [1], [0, 0, 1, 1], [], []>} : vector<16x74xf32>, vector<74x48xf32>, vector<16x48xf32> -> vector<16x48xf32>
    %c0_3 = arith.constant 0 : index
    %c0_4 = arith.constant 0 : index
    %17 = vector.load %arg6[%c0_3, %c0_4] : memref<16x64xf32, #tpu.memory_space<vmem>>, vector<16x48xf32>
    tpu.vector_store %arg6[%c0_3, %c0_4], %16 {strides = array<i32>} : memref<16x64xf32, #tpu.memory_space<vmem>>, vector<16x48xf32>,
    %c0_5 = arith.constant 0 : index
    %c0_6 = arith.constant 0 : index
    %18 = vector.load %arg2[%c0_5, %c0_6] : memref<16x16xi32, #tpu.memory_space<vmem>>, vector<16x16xi32>
    %c0_i32 = arith.constant 0 : i32
    %19 = vector.broadcast %c0_i32 : i32 to vector<16x16xi32>
    %20 = arith.cmpi eq, %18, %19 : vector<16x16xi32>
    %21 = arith.extui %20 : vector<16x16xi1> to vector<16x16xi32>
    %22 = arith.sitofp %21 : vector<16x16xi32> to vector<16x16xf32>
    %c0_7 = arith.constant 0 : index
    %c0_8 = arith.constant 0 : index
    %23 = vector.load %arg4[%c0_7, %c0_8] : memref<3x16xf32, #tpu.memory_space<vmem>>, vector<3x16xf32>
    %24 = vector.extract_strided_slice %23 {offsets = [0, 0], sizes = [1, 16], strides = [1, 1]} : vector<3x16xf32> to vector<1x16xf32>
    %25 = vector.extract_strided_slice %23 {offsets = [1, 0], sizes = [1, 16], strides = [1, 1]} : vector<3x16xf32> to vector<1x16xf32>
    %26 = vector.extract_strided_slice %23 {offsets = [2, 0], sizes = [1, 16], strides = [1, 1]} : vector<3x16xf32> to vector<1x16xf32>
    %c0_9 = arith.constant 0 : index
    %c0_10 = arith.constant 0 : index
    %27 = vector.load %arg5[%c0_9, %c0_10] : memref<1x16xf32, #tpu.memory_space<vmem>>, vector<1x16xf32>
    %28 = vector.shape_cast %27 : vector<1x16xf32> to vector<1x16xf32>
    %29 = vector.broadcast %28 : vector<1x16xf32> to vector<16x16xf32>
    %cst_11 = arith.constant 0.000000e+00 : f32
    %30 = vector.broadcast %cst_11 : f32 to vector<16x16xf32>
    %31 = vector.extract_strided_slice %22 {offsets = [0, 0], sizes = [16, 1], strides = [1, 1]} : vector<16x16xf32> to vector<16x1xf32>
    %32 = vector.broadcast %31 : vector<16x1xf32> to vector<16x16xf32>
    %33 = vector.broadcast %25 : vector<1x16xf32> to vector<16x16xf32>
    %34 = arith.mulf %32, %33 : vector<16x16xf32>
    %35 = arith.addf %29, %34 : vector<16x16xf32>
    %36 = vector.extract_strided_slice %22 {offsets = [0, 1], sizes = [16, 1], strides = [1, 1]} : vector<16x16xf32> to vector<16x1xf32>
    %37 = vector.broadcast %36 : vector<16x1xf32> to vector<16x16xf32>
    %38 = vector.broadcast %26 : vector<1x16xf32> to vector<16x16xf32>
    %39 = arith.mulf %37, %38 : vector<16x16xf32>
    %40 = arith.addf %35, %39 : vector<16x16xf32>
    %41 = vector.extract_strided_slice %22 {offsets = [0, 0], sizes = [16, 1], strides = [1, 1]} : vector<16x16xf32> to vector<16x1xf32>
    %42 = vector.broadcast %41 : vector<16x1xf32> to vector<16x16xf32>
    %43 = arith.mulf %40, %42 : vector<16x16xf32>
    %44 = arith.maximumf %30, %43 : vector<16x16xf32>
    %45 = vector.extract_strided_slice %22 {offsets = [0, 0], sizes = [16, 1], strides = [1, 1]} : vector<16x16xf32> to vector<16x1xf32>
    %46 = vector.broadcast %45 : vector<16x1xf32> to vector<16x16xf32>
    %47 = vector.broadcast %24 : vector<1x16xf32> to vector<16x16xf32>
    %48 = arith.mulf %46, %47 : vector<16x16xf32>
    %49 = arith.addf %29, %48 : vector<16x16xf32>
    %50 = vector.extract_strided_slice %22 {offsets = [0, 1], sizes = [16, 1], strides = [1, 1]} : vector<16x16xf32> to vector<16x1xf32>
    %51 = vector.broadcast %50 : vector<16x1xf32> to vector<16x16xf32>
    %52 = vector.broadcast %25 : vector<1x16xf32> to vector<16x16xf32>
    %53 = arith.mulf %51, %52 : vector<16x16xf32>
    %54 = arith.addf %49, %53 : vector<16x16xf32>
    %55 = vector.extract_strided_slice %22 {offsets = [0, 2], sizes = [16, 1], strides = [1, 1]} : vector<16x16xf32> to vector<16x1xf32>
    %56 = vector.broadcast %55 : vector<16x1xf32> to vector<16x16xf32>
    %57 = vector.broadcast %26 : vector<1x16xf32> to vector<16x16xf32>
    %58 = arith.mulf %56, %57 : vector<16x16xf32>
    %59 = arith.addf %54, %58 : vector<16x16xf32>
    %60 = vector.extract_strided_slice %22 {offsets = [0, 1], sizes = [16, 1], strides = [1, 1]} : vector<16x16xf32> to vector<16x1xf32>
    %61 = vector.broadcast %60 : vector<16x1xf32> to vector<16x16xf32>
    %62 = arith.mulf %59, %61 : vector<16x16xf32>
    %63 = arith.maximumf %44, %62 : vector<16x16xf32>
    %64 = vector.extract_strided_slice %22 {offsets = [0, 1], sizes = [16, 1], strides = [1, 1]} : vector<16x16xf32> to vector<16x1xf32>
    %65 = vector.broadcast %64 : vector<16x1xf32> to vector<16x16xf32>
    %66 = vector.broadcast %24 : vector<1x16xf32> to vector<16x16xf32>
    %67 = arith.mulf %65, %66 : vector<16x16xf32>
    %68 = arith.addf %29, %67 : vector<16x16xf32>
    %69 = vector.extract_strided_slice %22 {offsets = [0, 2], sizes = [16, 1], strides = [1, 1]} : vector<16x16xf32> to vector<16x1xf32>
    %70 = vector.broadcast %69 : vector<16x1xf32> to vector<16x16xf32>
    %71 = vector.broadcast %25 : vector<1x16xf32> to vector<16x16xf32>
    %72 = arith.mulf %70, %71 : vector<16x16xf32>
    %73 = arith.addf %68, %72 : vector<16x16xf32>
    %74 = vector.extract_strided_slice %22 {offsets = [0, 3], sizes = [16, 1], strides = [1, 1]} : vector<16x16xf32> to vector<16x1xf32>
    %75 = vector.broadcast %74 : vector<16x1xf32> to vector<16x16xf32>
    %76 = vector.broadcast %26 : vector<1x16xf32> to vector<16x16xf32>
    %77 = arith.mulf %75, %76 : vector<16x16xf32>
    %78 = arith.addf %73, %77 : vector<16x16xf32>
    %79 = vector.extract_strided_slice %22 {offsets = [0, 2], sizes = [16, 1], strides = [1, 1]} : vector<16x16xf32> to vector<16x1xf32>
    %80 = vector.broadcast %79 : vector<16x1xf32> to vector<16x16xf32>
    %81 = arith.mulf %78, %80 : vector<16x16xf32>
    %82 = arith.maximumf %63, %81 : vector<16x16xf32>
    %83 = vector.extract_strided_slice %22 {offsets = [0, 2], sizes = [16, 1], strides = [1, 1]} : vector<16x16xf32> to vector<16x1xf32>
    %84 = vector.broadcast %83 : vector<16x1xf32> to vector<16x16xf32>
    %85 = vector.broadcast %24 : vector<1x16xf32> to vector<16x16xf32>
    %86 = arith.mulf %84, %85 : vector<16x16xf32>
    %87 = arith.addf %29, %86 : vector<16x16xf32>
    %88 = vector.extract_strided_slice %22 {offsets = [0, 3], sizes = [16, 1], strides = [1, 1]} : vector<16x16xf32> to vector<16x1xf32>
    %89 = vector.broadcast %88 : vector<16x1xf32> to vector<16x16xf32>
    %90 = vector.broadcast %25 : vector<1x16xf32> to vector<16x16xf32>
    %91 = arith.mulf %89, %90 : vector<16x16xf32>
    %92 = arith.addf %87, %91 : vector<16x16xf32>
    %93 = vector.extract_strided_slice %22 {offsets = [0, 4], sizes = [16, 1], strides = [1, 1]} : vector<16x16xf32> to vector<16x1xf32>
    %94 = vector.broadcast %93 : vector<16x1xf32> to vector<16x16xf32>
    %95 = vector.broadcast %26 : vector<1x16xf32> to vector<16x16xf32>
    %96 = arith.mulf %94, %95 : vector<16x16xf32>
    %97 = arith.addf %92, %96 : vector<16x16xf32>
    %98 = vector.extract_strided_slice %22 {offsets = [0, 3], sizes = [16, 1], strides = [1, 1]} : vector<16x16xf32> to vector<16x1xf32>
    %99 = vector.broadcast %98 : vector<16x1xf32> to vector<16x16xf32>
    %100 = arith.mulf %97, %99 : vector<16x16xf32>
    %101 = arith.maximumf %82, %100 : vector<16x16xf32>
    %102 = vector.extract_strided_slice %22 {offsets = [0, 3], sizes = [16, 1], strides = [1, 1]} : vector<16x16xf32> to vector<16x1xf32>
    %103 = vector.broadcast %102 : vector<16x1xf32> to vector<16x16xf32>
    %104 = vector.broadcast %24 : vector<1x16xf32> to vector<16x16xf32>
    %105 = arith.mulf %103, %104 : vector<16x16xf32>
    %106 = arith.addf %29, %105 : vector<16x16xf32>
    %107 = vector.extract_strided_slice %22 {offsets = [0, 4], sizes = [16, 1], strides = [1, 1]} : vector<16x16xf32> to vector<16x1xf32>
    %108 = vector.broadcast %107 : vector<16x1xf32> to vector<16x16xf32>
    %109 = vector.broadcast %25 : vector<1x16xf32> to vector<16x16xf32>
    %110 = arith.mulf %108, %109 : vector<16x16xf32>
    %111 = arith.addf %106, %110 : vector<16x16xf32>
    %112 = vector.extract_strided_slice %22 {offsets = [0, 5], sizes = [16, 1], strides = [1, 1]} : vector<16x16xf32> to vector<16x1xf32>
    %113 = vector.broadcast %112 : vector<16x1xf32> to vector<16x16xf32>
    %114 = vector.broadcast %26 : vector<1x16xf32> to vector<16x16xf32>
    %115 = arith.mulf %113, %114 : vector<16x16xf32>
    %116 = arith.addf %111, %115 : vector<16x16xf32>
    %117 = vector.extract_strided_slice %22 {offsets = [0, 4], sizes = [16, 1], strides = [1, 1]} : vector<16x16xf32> to vector<16x1xf32>
    %118 = vector.broadcast %117 : vector<16x1xf32> to vector<16x16xf32>
    %119 = arith.mulf %116, %118 : vector<16x16xf32>
    %120 = arith.maximumf %101, %119 : vector<16x16xf32>
    %121 = vector.extract_strided_slice %22 {offsets = [0, 4], sizes = [16, 1], strides = [1, 1]} : vector<16x16xf32> to vector<16x1xf32>
    %122 = vector.broadcast %121 : vector<16x1xf32> to vector<16x16xf32>
    %123 = vector.broadcast %24 : vector<1x16xf32> to vector<16x16xf32>
    %124 = arith.mulf %122, %123 : vector<16x16xf32>
    %125 = arith.addf %29, %124 : vector<16x16xf32>
    %126 = vector.extract_strided_slice %22 {offsets = [0, 5], sizes = [16, 1], strides = [1, 1]} : vector<16x16xf32> to vector<16x1xf32>
    %127 = vector.broadcast %126 : vector<16x1xf32> to vector<16x16xf32>
    %128 = vector.broadcast %25 : vector<1x16xf32> to vector<16x16xf32>
    %129 = arith.mulf %127, %128 : vector<16x16xf32>
    %130 = arith.addf %125, %129 : vector<16x16xf32>
    %131 = vector.extract_strided_slice %22 {offsets = [0, 6], sizes = [16, 1], strides = [1, 1]} : vector<16x16xf32> to vector<16x1xf32>
    %132 = vector.broadcast %131 : vector<16x1xf32> to vector<16x16xf32>
    %133 = vector.broadcast %26 : vector<1x16xf32> to vector<16x16xf32>
    %134 = arith.mulf %132, %133 : vector<16x16xf32>
    %135 = arith.addf %130, %134 : vector<16x16xf32>
    %136 = vector.extract_strided_slice %22 {offsets = [0, 5], sizes = [16, 1], strides = [1, 1]} : vector<16x16xf32> to vector<16x1xf32>
    %137 = vector.broadcast %136 : vector<16x1xf32> to vector<16x16xf32>
    %138 = arith.mulf %135, %137 : vector<16x16xf32>
    %139 = arith.maximumf %120, %138 : vector<16x16xf32>
    %140 = vector.extract_strided_slice %22 {offsets = [0, 5], sizes = [16, 1], strides = [1, 1]} : vector<16x16xf32> to vector<16x1xf32>
    %141 = vector.broadcast %140 : vector<16x1xf32> to vector<16x16xf32>
    %142 = vector.broadcast %24 : vector<1x16xf32> to vector<16x16xf32>
    %143 = arith.mulf %141, %142 : vector<16x16xf32>
    %144 = arith.addf %29, %143 : vector<16x16xf32>
    %145 = vector.extract_strided_slice %22 {offsets = [0, 6], sizes = [16, 1], strides = [1, 1]} : vector<16x16xf32> to vector<16x1xf32>
    %146 = vector.broadcast %145 : vector<16x1xf32> to vector<16x16xf32>
    %147 = vector.broadcast %25 : vector<1x16xf32> to vector<16x16xf32>
    %148 = arith.mulf %146, %147 : vector<16x16xf32>
    %149 = arith.addf %144, %148 : vector<16x16xf32>
    %150 = vector.extract_strided_slice %22 {offsets = [0, 7], sizes = [16, 1], strides = [1, 1]} : vector<16x16xf32> to vector<16x1xf32>
    %151 = vector.broadcast %150 : vector<16x1xf32> to vector<16x16xf32>
    %152 = vector.broadcast %26 : vector<1x16xf32> to vector<16x16xf32>
    %153 = arith.mulf %151, %152 : vector<16x16xf32>
    %154 = arith.addf %149, %153 : vector<16x16xf32>
    %155 = vector.extract_strided_slice %22 {offsets = [0, 6], sizes = [16, 1], strides = [1, 1]} : vector<16x16xf32> to vector<16x1xf32>
    %156 = vector.broadcast %155 : vector<16x1xf32> to vector<16x16xf32>
    %157 = arith.mulf %154, %156 : vector<16x16xf32>
    %158 = arith.maximumf %139, %157 : vector<16x16xf32>
    %159 = vector.extract_strided_slice %22 {offsets = [0, 6], sizes = [16, 1], strides = [1, 1]} : vector<16x16xf32> to vector<16x1xf32>
    %160 = vector.broadcast %159 : vector<16x1xf32> to vector<16x16xf32>
    %161 = vector.broadcast %24 : vector<1x16xf32> to vector<16x16xf32>
    %162 = arith.mulf %160, %161 : vector<16x16xf32>
    %163 = arith.addf %29, %162 : vector<16x16xf32>
    %164 = vector.extract_strided_slice %22 {offsets = [0, 7], sizes = [16, 1], strides = [1, 1]} : vector<16x16xf32> to vector<16x1xf32>
    %165 = vector.broadcast %164 : vector<16x1xf32> to vector<16x16xf32>
    %166 = vector.broadcast %25 : vector<1x16xf32> to vector<16x16xf32>
    %167 = arith.mulf %165, %166 : vector<16x16xf32>
    %168 = arith.addf %163, %167 : vector<16x16xf32>
    %169 = vector.extract_strided_slice %22 {offsets = [0, 8], sizes = [16, 1], strides = [1, 1]} : vector<16x16xf32> to vector<16x1xf32>
    %170 = vector.broadcast %169 : vector<16x1xf32> to vector<16x16xf32>
    %171 = vector.broadcast %26 : vector<1x16xf32> to vector<16x16xf32>
    %172 = arith.mulf %170, %171 : vector<16x16xf32>
    %173 = arith.addf %168, %172 : vector<16x16xf32>
    %174 = vector.extract_strided_slice %22 {offsets = [0, 7], sizes = [16, 1], strides = [1, 1]} : vector<16x16xf32> to vector<16x1xf32>
    %175 = vector.broadcast %174 : vector<16x1xf32> to vector<16x16xf32>
    %176 = arith.mulf %173, %175 : vector<16x16xf32>
    %177 = arith.maximumf %158, %176 : vector<16x16xf32>
    %178 = vector.extract_strided_slice %22 {offsets = [0, 7], sizes = [16, 1], strides = [1, 1]} : vector<16x16xf32> to vector<16x1xf32>
    %179 = vector.broadcast %178 : vector<16x1xf32> to vector<16x16xf32>
    %180 = vector.broadcast %24 : vector<1x16xf32> to vector<16x16xf32>
    %181 = arith.mulf %179, %180 : vector<16x16xf32>
    %182 = arith.addf %29, %181 : vector<16x16xf32>
    %183 = vector.extract_strided_slice %22 {offsets = [0, 8], sizes = [16, 1], strides = [1, 1]} : vector<16x16xf32> to vector<16x1xf32>
    %184 = vector.broadcast %183 : vector<16x1xf32> to vector<16x16xf32>
    %185 = vector.broadcast %25 : vector<1x16xf32> to vector<16x16xf32>
    %186 = arith.mulf %184, %185 : vector<16x16xf32>
    %187 = arith.addf %182, %186 : vector<16x16xf32>
    %188 = vector.extract_strided_slice %22 {offsets = [0, 9], sizes = [16, 1], strides = [1, 1]} : vector<16x16xf32> to vector<16x1xf32>
    %189 = vector.broadcast %188 : vector<16x1xf32> to vector<16x16xf32>
    %190 = vector.broadcast %26 : vector<1x16xf32> to vector<16x16xf32>
    %191 = arith.mulf %189, %190 : vector<16x16xf32>
    %192 = arith.addf %187, %191 : vector<16x16xf32>
    %193 = vector.extract_strided_slice %22 {offsets = [0, 8], sizes = [16, 1], strides = [1, 1]} : vector<16x16xf32> to vector<16x1xf32>
    %194 = vector.broadcast %193 : vector<16x1xf32> to vector<16x16xf32>
    %195 = arith.mulf %192, %194 : vector<16x16xf32>
    %196 = arith.maximumf %177, %195 : vector<16x16xf32>
    %197 = vector.extract_strided_slice %22 {offsets = [0, 8], sizes = [16, 1], strides = [1, 1]} : vector<16x16xf32> to vector<16x1xf32>
    %198 = vector.broadcast %197 : vector<16x1xf32> to vector<16x16xf32>
    %199 = vector.broadcast %24 : vector<1x16xf32> to vector<16x16xf32>
    %200 = arith.mulf %198, %199 : vector<16x16xf32>
    %201 = arith.addf %29, %200 : vector<16x16xf32>
    %202 = vector.extract_strided_slice %22 {offsets = [0, 9], sizes = [16, 1], strides = [1, 1]} : vector<16x16xf32> to vector<16x1xf32>
    %203 = vector.broadcast %202 : vector<16x1xf32> to vector<16x16xf32>
    %204 = vector.broadcast %25 : vector<1x16xf32> to vector<16x16xf32>
    %205 = arith.mulf %203, %204 : vector<16x16xf32>
    %206 = arith.addf %201, %205 : vector<16x16xf32>
    %207 = vector.extract_strided_slice %22 {offsets = [0, 10], sizes = [16, 1], strides = [1, 1]} : vector<16x16xf32> to vector<16x1xf32>
    %208 = vector.broadcast %207 : vector<16x1xf32> to vector<16x16xf32>
    %209 = vector.broadcast %26 : vector<1x16xf32> to vector<16x16xf32>
    %210 = arith.mulf %208, %209 : vector<16x16xf32>
    %211 = arith.addf %206, %210 : vector<16x16xf32>
    %212 = vector.extract_strided_slice %22 {offsets = [0, 9], sizes = [16, 1], strides = [1, 1]} : vector<16x16xf32> to vector<16x1xf32>
    %213 = vector.broadcast %212 : vector<16x1xf32> to vector<16x16xf32>
    %214 = arith.mulf %211, %213 : vector<16x16xf32>
    %215 = arith.maximumf %196, %214 : vector<16x16xf32>
    %216 = vector.extract_strided_slice %22 {offsets = [0, 9], sizes = [16, 1], strides = [1, 1]} : vector<16x16xf32> to vector<16x1xf32>
    %217 = vector.broadcast %216 : vector<16x1xf32> to vector<16x16xf32>
    %218 = vector.broadcast %24 : vector<1x16xf32> to vector<16x16xf32>
    %219 = arith.mulf %217, %218 : vector<16x16xf32>
    %220 = arith.addf %29, %219 : vector<16x16xf32>
    %221 = vector.extract_strided_slice %22 {offsets = [0, 10], sizes = [16, 1], strides = [1, 1]} : vector<16x16xf32> to vector<16x1xf32>
    %222 = vector.broadcast %221 : vector<16x1xf32> to vector<16x16xf32>
    %223 = vector.broadcast %25 : vector<1x16xf32> to vector<16x16xf32>
    %224 = arith.mulf %222, %223 : vector<16x16xf32>
    %225 = arith.addf %220, %224 : vector<16x16xf32>
    %226 = vector.extract_strided_slice %22 {offsets = [0, 11], sizes = [16, 1], strides = [1, 1]} : vector<16x16xf32> to vector<16x1xf32>
    %227 = vector.broadcast %226 : vector<16x1xf32> to vector<16x16xf32>
    %228 = vector.broadcast %26 : vector<1x16xf32> to vector<16x16xf32>
    %229 = arith.mulf %227, %228 : vector<16x16xf32>
    %230 = arith.addf %225, %229 : vector<16x16xf32>
    %231 = vector.extract_strided_slice %22 {offsets = [0, 10], sizes = [16, 1], strides = [1, 1]} : vector<16x16xf32> to vector<16x1xf32>
    %232 = vector.broadcast %231 : vector<16x1xf32> to vector<16x16xf32>
    %233 = arith.mulf %230, %232 : vector<16x16xf32>
    %234 = arith.maximumf %215, %233 : vector<16x16xf32>
    %235 = vector.extract_strided_slice %22 {offsets = [0, 10], sizes = [16, 1], strides = [1, 1]} : vector<16x16xf32> to vector<16x1xf32>
    %236 = vector.broadcast %235 : vector<16x1xf32> to vector<16x16xf32>
    %237 = vector.broadcast %24 : vector<1x16xf32> to vector<16x16xf32>
    %238 = arith.mulf %236, %237 : vector<16x16xf32>
    %239 = arith.addf %29, %238 : vector<16x16xf32>
    %240 = vector.extract_strided_slice %22 {offsets = [0, 11], sizes = [16, 1], strides = [1, 1]} : vector<16x16xf32> to vector<16x1xf32>
    %241 = vector.broadcast %240 : vector<16x1xf32> to vector<16x16xf32>
    %242 = vector.broadcast %25 : vector<1x16xf32> to vector<16x16xf32>
    %243 = arith.mulf %241, %242 : vector<16x16xf32>
    %244 = arith.addf %239, %243 : vector<16x16xf32>
    %245 = vector.extract_strided_slice %22 {offsets = [0, 12], sizes = [16, 1], strides = [1, 1]} : vector<16x16xf32> to vector<16x1xf32>
    %246 = vector.broadcast %245 : vector<16x1xf32> to vector<16x16xf32>
    %247 = vector.broadcast %26 : vector<1x16xf32> to vector<16x16xf32>
    %248 = arith.mulf %246, %247 : vector<16x16xf32>
    %249 = arith.addf %244, %248 : vector<16x16xf32>
    %250 = vector.extract_strided_slice %22 {offsets = [0, 11], sizes = [16, 1], strides = [1, 1]} : vector<16x16xf32> to vector<16x1xf32>
    %251 = vector.broadcast %250 : vector<16x1xf32> to vector<16x16xf32>
    %252 = arith.mulf %249, %251 : vector<16x16xf32>
    %253 = arith.maximumf %234, %252 : vector<16x16xf32>
    %254 = vector.extract_strided_slice %22 {offsets = [0, 11], sizes = [16, 1], strides = [1, 1]} : vector<16x16xf32> to vector<16x1xf32>
    %255 = vector.broadcast %254 : vector<16x1xf32> to vector<16x16xf32>
    %256 = vector.broadcast %24 : vector<1x16xf32> to vector<16x16xf32>
    %257 = arith.mulf %255, %256 : vector<16x16xf32>
    %258 = arith.addf %29, %257 : vector<16x16xf32>
    %259 = vector.extract_strided_slice %22 {offsets = [0, 12], sizes = [16, 1], strides = [1, 1]} : vector<16x16xf32> to vector<16x1xf32>
    %260 = vector.broadcast %259 : vector<16x1xf32> to vector<16x16xf32>
    %261 = vector.broadcast %25 : vector<1x16xf32> to vector<16x16xf32>
    %262 = arith.mulf %260, %261 : vector<16x16xf32>
    %263 = arith.addf %258, %262 : vector<16x16xf32>
    %264 = vector.extract_strided_slice %22 {offsets = [0, 13], sizes = [16, 1], strides = [1, 1]} : vector<16x16xf32> to vector<16x1xf32>
    %265 = vector.broadcast %264 : vector<16x1xf32> to vector<16x16xf32>
    %266 = vector.broadcast %26 : vector<1x16xf32> to vector<16x16xf32>
    %267 = arith.mulf %265, %266 : vector<16x16xf32>
    %268 = arith.addf %263, %267 : vector<16x16xf32>
    %269 = vector.extract_strided_slice %22 {offsets = [0, 12], sizes = [16, 1], strides = [1, 1]} : vector<16x16xf32> to vector<16x1xf32>
    %270 = vector.broadcast %269 : vector<16x1xf32> to vector<16x16xf32>
    %271 = arith.mulf %268, %270 : vector<16x16xf32>
    %272 = arith.maximumf %253, %271 : vector<16x16xf32>
    %273 = vector.extract_strided_slice %22 {offsets = [0, 12], sizes = [16, 1], strides = [1, 1]} : vector<16x16xf32> to vector<16x1xf32>
    %274 = vector.broadcast %273 : vector<16x1xf32> to vector<16x16xf32>
    %275 = vector.broadcast %24 : vector<1x16xf32> to vector<16x16xf32>
    %276 = arith.mulf %274, %275 : vector<16x16xf32>
    %277 = arith.addf %29, %276 : vector<16x16xf32>
    %278 = vector.extract_strided_slice %22 {offsets = [0, 13], sizes = [16, 1], strides = [1, 1]} : vector<16x16xf32> to vector<16x1xf32>
    %279 = vector.broadcast %278 : vector<16x1xf32> to vector<16x16xf32>
    %280 = vector.broadcast %25 : vector<1x16xf32> to vector<16x16xf32>
    %281 = arith.mulf %279, %280 : vector<16x16xf32>
    %282 = arith.addf %277, %281 : vector<16x16xf32>
    %283 = vector.extract_strided_slice %22 {offsets = [0, 14], sizes = [16, 1], strides = [1, 1]} : vector<16x16xf32> to vector<16x1xf32>
    %284 = vector.broadcast %283 : vector<16x1xf32> to vector<16x16xf32>
    %285 = vector.broadcast %26 : vector<1x16xf32> to vector<16x16xf32>
    %286 = arith.mulf %284, %285 : vector<16x16xf32>
    %287 = arith.addf %282, %286 : vector<16x16xf32>
    %288 = vector.extract_strided_slice %22 {offsets = [0, 13], sizes = [16, 1], strides = [1, 1]} : vector<16x16xf32> to vector<16x1xf32>
    %289 = vector.broadcast %288 : vector<16x1xf32> to vector<16x16xf32>
    %290 = arith.mulf %287, %289 : vector<16x16xf32>
    %291 = arith.maximumf %272, %290 : vector<16x16xf32>
    %292 = vector.extract_strided_slice %22 {offsets = [0, 13], sizes = [16, 1], strides = [1, 1]} : vector<16x16xf32> to vector<16x1xf32>
    %293 = vector.broadcast %292 : vector<16x1xf32> to vector<16x16xf32>
    %294 = vector.broadcast %24 : vector<1x16xf32> to vector<16x16xf32>
    %295 = arith.mulf %293, %294 : vector<16x16xf32>
    %296 = arith.addf %29, %295 : vector<16x16xf32>
    %297 = vector.extract_strided_slice %22 {offsets = [0, 14], sizes = [16, 1], strides = [1, 1]} : vector<16x16xf32> to vector<16x1xf32>
    %298 = vector.broadcast %297 : vector<16x1xf32> to vector<16x16xf32>
    %299 = vector.broadcast %25 : vector<1x16xf32> to vector<16x16xf32>
    %300 = arith.mulf %298, %299 : vector<16x16xf32>
    %301 = arith.addf %296, %300 : vector<16x16xf32>
    %302 = vector.extract_strided_slice %22 {offsets = [0, 15], sizes = [16, 1], strides = [1, 1]} : vector<16x16xf32> to vector<16x1xf32>
    %303 = vector.broadcast %302 : vector<16x1xf32> to vector<16x16xf32>
    %304 = vector.broadcast %26 : vector<1x16xf32> to vector<16x16xf32>
    %305 = arith.mulf %303, %304 : vector<16x16xf32>
    %306 = arith.addf %301, %305 : vector<16x16xf32>
    %307 = vector.extract_strided_slice %22 {offsets = [0, 14], sizes = [16, 1], strides = [1, 1]} : vector<16x16xf32> to vector<16x1xf32>
    %308 = vector.broadcast %307 : vector<16x1xf32> to vector<16x16xf32>
    %309 = arith.mulf %306, %308 : vector<16x16xf32>
    %310 = arith.maximumf %291, %309 : vector<16x16xf32>
    %311 = vector.extract_strided_slice %22 {offsets = [0, 14], sizes = [16, 1], strides = [1, 1]} : vector<16x16xf32> to vector<16x1xf32>
    %312 = vector.broadcast %311 : vector<16x1xf32> to vector<16x16xf32>
    %313 = vector.broadcast %24 : vector<1x16xf32> to vector<16x16xf32>
    %314 = arith.mulf %312, %313 : vector<16x16xf32>
    %315 = arith.addf %29, %314 : vector<16x16xf32>
    %316 = vector.extract_strided_slice %22 {offsets = [0, 15], sizes = [16, 1], strides = [1, 1]} : vector<16x16xf32> to vector<16x1xf32>
    %317 = vector.broadcast %316 : vector<16x1xf32> to vector<16x16xf32>
    %318 = vector.broadcast %25 : vector<1x16xf32> to vector<16x16xf32>
    %319 = arith.mulf %317, %318 : vector<16x16xf32>
    %320 = arith.addf %315, %319 : vector<16x16xf32>
    %321 = vector.extract_strided_slice %22 {offsets = [0, 15], sizes = [16, 1], strides = [1, 1]} : vector<16x16xf32> to vector<16x1xf32>
    %322 = vector.broadcast %321 : vector<16x1xf32> to vector<16x16xf32>
    %323 = arith.mulf %320, %322 : vector<16x16xf32>
    %324 = arith.maximumf %310, %323 : vector<16x16xf32>
    %325 = vector.extract_strided_slice %22 {offsets = [0, 15], sizes = [16, 1], strides = [1, 1]} : vector<16x16xf32> to vector<16x1xf32>
    %326 = vector.broadcast %325 : vector<16x1xf32> to vector<16x16xf32>
    %327 = vector.broadcast %24 : vector<1x16xf32> to vector<16x16xf32>
    %328 = arith.mulf %326, %327 : vector<16x16xf32>
    %329 = arith.addf %29, %328 : vector<16x16xf32>
    %330 = arith.maximumf %324, %329 : vector<16x16xf32>
    %331 = arith.maximumf %330, %29 : vector<16x16xf32>
    %cst_12 = arith.constant 0.000000e+00 : f32
    %332 = vector.broadcast %cst_12 : f32 to vector<16x16xf32>
    %333 = arith.maximumf %331, %332 : vector<16x16xf32>
    %c0_13 = arith.constant 0 : index
    %c48 = arith.constant 48 : index
    %334 = vector.load %arg6[%c0_13, %c48] : memref<16x64xf32, #tpu.memory_space<vmem>>, vector<16x16xf32>
    tpu.vector_store %arg6[%c0_13, %c48], %333 {strides = array<i32>} : memref<16x64xf32, #tpu.memory_space<vmem>>, vector<16x16xf32>,
    return
  }
  func.func @transform_0(%arg0: i32) -> (i32, i32) {
    %c0_i32 = arith.constant 0 : i32
    %c0_i32_0 = arith.constant 0 : i32
    return %arg0, %c0_i32 : i32, i32
  }
  func.func @transform_1(%arg0: i32) -> (i32, i32) {
    %c0_i32 = arith.constant 0 : i32
    %c0_i32_0 = arith.constant 0 : i32
    return %arg0, %c0_i32 : i32, i32
  }
  func.func @transform_2(%arg0: i32) -> (i32, i32) {
    %c0_i32 = arith.constant 0 : i32
    %c0_i32_0 = arith.constant 0 : i32
    %c0_i32_1 = arith.constant 0 : i32
    return %c0_i32, %c0_i32_0 : i32, i32
  }
  func.func @transform_3(%arg0: i32) -> (i32, i32) {
    %c0_i32 = arith.constant 0 : i32
    %c0_i32_0 = arith.constant 0 : i32
    %c0_i32_1 = arith.constant 0 : i32
    return %c0_i32, %c0_i32_0 : i32, i32
  }
  func.func @transform_4(%arg0: i32) -> (i32, i32) {
    %c0_i32 = arith.constant 0 : i32
    %c0_i32_0 = arith.constant 0 : i32
    %c0_i32_1 = arith.constant 0 : i32
    return %c0_i32, %c0_i32_0 : i32, i32
  }
  func.func @transform_5(%arg0: i32) -> (i32, i32) {
    %c0_i32 = arith.constant 0 : i32
    %c0_i32_0 = arith.constant 0 : i32
    return %arg0, %c0_i32 : i32, i32
  }
}

</mosaic_0001>

<bundles_post_ra>
// kernel: tpu_custom_call.1
= control target key start
LH: loop header
LB: loop body
LE: loop exit
PB: predicated region body
PF: predicated region fallthrough
CT: control target
= control target key end

     0   :  { %v787_v2 = vmov 0   ;;  %v788_v5 = vmov 1   ;;  %s1091_s0 = inlined_call_operand.vmem [shape: s32[16,3], index: 0, kind: input, shape index: {}]   ;;  %s1092_s1 = inlined_call_operand.vmem [shape: s32[16,16], index: 1, kind: input, shape index: {}]   ;;  %s1093_s2 = inlined_call_operand.vmem [shape: f32[74,48], index: 2, kind: input, shape index: {}]   ;;  %s1094_s3 = inlined_call_operand.vmem [shape: f32[3,16], index: 3, kind: input, shape index: {}]   ;;  %s1095_s4 = inlined_call_operand.vmem [shape: f32[1,16], index: 4, kind: input, shape index: {}]   ;;  %s1096_s5 = inlined_call_operand.hbm [shape: f32[16,64], index: 5, kind: output, shape index: {}]  }
   0x1   :  { %v22_v0 = vld [vmem:[%s1091_s0 + $0x8] sm:$0xff]  ;;  %v21_v1 = vld [vmem:[%s1091_s0] sm:$0xff]  ;;  %665 = vset.pattern.permute.xlu1 %v787_v2  ;;  %663 = vset.pattern.permute.xlu0 %v787_v2 }
   0x2   :  { %29 = vperm.xlu1 %665, %v22_v0   ;;  %26 = vperm.xlu0 %663, %v21_v1   ;;  %v156_v3 = vld [vmem:[%s1092_s1] sm:$0xff]  ;;  %v157_v4 = vld [vmem:[%s1092_s1 + $0x8] sm:$0xff] }
   0x3   :  { %vm158_vm0 = vcmp.eq.s32.totalorder %v156_v3, 0  ;;  %vm159_vm1 = vcmp.eq.s32.totalorder %v157_v4, 0 }
   0x6   :  { %666 = vset.pattern.permute.xlu1 %v788_v5  ;;  %664 = vset.pattern.permute.xlu0 %v788_v5 }
   0x7   :  { %10 = vsyncpa [#allocation3], 0  ;;  %37 = vperm.xlu1 %666, %v22_v0   ;;  %34 = vperm.xlu0 %664, %v21_v1   ;;  %v66_v6 = vld [vmem:[%s1093_s2 + $0x48] sm:$0x3]  ;;  %v789_v7 = vmov 0.0   ;;  %vm74_vm2 = vcmask 1041408   ;;  %v23_v36 = vlaneseq }
   0x8   :  { %v604_v8 = vsel %vm158_vm0, 1.0, %v789_v7  ;;  %v605_v9 = vsel %vm159_vm1, 1.0, %v789_v7  ;;  %619 = vmatprep.subr.msk.mxu0 %vm74_vm2, %v66_v6  ;;  %v790_v10 = vmov 2   ;;  %v65_v11 = vld [vmem:[%s1093_s2 + $0x40] sm:$0xff]  ;;  %v64_v13 = vld [vmem:[%s1093_s2 + $0x38] sm:$0xff]  ;;  %v63_v14 = vld [vmem:[%s1093_s2 + $0x30] sm:$0xff] }
   0x9   :  { %v858_v12 = vpack.i.bf16 %v605_v9, %v604_v8  ;;  %620 = vmatpush3.msk.msra.mxu0 %vm74_vm2, %v66_v6  ;;  %v62_v15 = vld [vmem:[%s1093_s2 + $0x28] sm:$0xff]  ;;  %v791_v16 = vmov 4   ;;  %v61_v17 = vld [vmem:[%s1093_s2 + $0x20] sm:$0xff]  ;;  %v60_v18 = vld [vmem:[%s1093_s2 + $0x18] sm:$0xff]  ;;  %v792_v19 = vmov 7   ;;  %v793_v20 = vmov 3  }
   0xa   :  { %621 = vmatprep.subr.mxu0 %v65_v11  ;;  %v59_v21 = vld [vmem:[%s1093_s2 + $0x10] sm:$0xff]  ;;  %v58_v22 = vld [vmem:[%s1093_s2 + $0x8] sm:$0xff]  ;;  %v794_v23 = vmov 10   ;;  %v795_v24 = vmov 5   ;;  %v57_v25 = vld [vmem:[%s1093_s2] sm:$0xff]  ;;  %v796_v26 = vmov 13  }
   0xb   :  { %667 = vset.pattern.permute.xlu1 %v790_v10  ;;  %668 = vset.pattern.permute.xlu0 %v790_v10  ;;  %v797_v27 = vmov 6   ;;  %v798_v28 = vmov 15   ;;  %v799_v29 = vmov 8   ;;  %v800_v30 = vmov 9   ;;  %v164_v44 = vld [vmem:[%s1094_s3] sm:$0x7] }
   0xc   :  { %44 = vperm.xlu1 %667, %v21_v1   ;;  %47 = vperm.xlu0 %668, %v22_v0   ;;  %v801_v31 = vmov 11   ;;  %v802_v32 = vmov 12   ;;  %v803_v33 = vmov 14   ;;  %v24_v37 = vand.u32 127, %v23_v36  ;;  %v918_v56 = vld [vmem:[%s1095_s4] ss:$0 sm:$0xff] }
   0xd   :  { %622 = vmatpush3.msra.mxu0 %v65_v11  ;;  %v183_v38 = vshrl.u32 %v23_v36, 7  ;;  %vm67_vm12 = vcmask 605184   ;;  %s804_s4 = smov 48   ;;  %vm153_vm14 = vcmask 392192   ;;  %s805_s21 = smov [#allocation2]   ;;  %vm580_vm15 = vcmask 523648  }
   0xe   :  { %623 = vmatprep.subr.mxu0 %v64_v13  ;;  %s588_s22 = sshll.u32 %s805_s21, 4  ;;  %s589_s22 = int_to_ptr.vmem [resolvable:$true] %s588_s22 }
   0xf   :  { %624 = vmatpush3.msra.mxu0 %v64_v13  ;;  %v184_v41 = vsub.s32 1, %v183_v38  ;;  %v200_v42 = vsub.s32 2, %v183_v38  ;;  %v212_v43 = vsub.s32 0, %v183_v38  ;;  %s765_s23 = scalar_lea.vmem %s589_s22, 256  ;;  %p770_p1 = scmp.lt.s32.totalorder %s589_s22, %s589_s22 }
  0x10   :  { %669 = vset.pattern.permute.xlu1 %v787_v2  ;;  %682 = vperm.xlu0 %668, %v858_v12   ;;  %p766_p0 = scmp.ne.s32.totalorder %s589_s22, %s765_s23  ;;  %p771_p2 = scmp.lt.s32.totalorder %s765_s23, %s765_s23 }
  0x11   :  { %671 = vperm.xlu1 %669, %v858_v12   ;;  %625 = vmatprep.subr.mxu0 %v63_v14  ;;  %v903_v47 = vrot.slane %v164_v44, %v184_v41  ;;  %v905_v48 = vrot.slane %v164_v44, %v200_v42  ;;  %v907_v49 = vrot.slane %v164_v44, %v212_v43 }
  0x12   :  { %626 = vmatpush3.msra.mxu0 %v63_v14  ;;  %p772_p3 = por %p771_p2, %p770_p1 }
  0x13   :  { %627 = vmatprep.subr.mxu0 %v62_v15 }
  0x14   :  { %692 = vset.pattern.permute.xlu0 %v791_v16  ;;  %628 = vmatpush3.msra.mxu0 %v62_v15  ;;  %p773_p4 = pnand %p772_p3, %p766_p0 }
  0x15   :  { %675 = vset.pattern.permute.xlu1 %v788_v5  ;;  %694 = vperm.xlu0 %692, %v858_v12  }
  0x16   :  { %677 = vperm.xlu1 %675, %v858_v12   ;;  %629 = vmatprep.subr.mxu0 %v61_v17 }
  0x17   :  { %630 = vmatpush3.msra.mxu0 %v61_v17 }
  0x18   :  { %631 = vmatprep.subr.mxu0 %v60_v18 }
  0x19   :  { %710 = vset.pattern.permute.xlu0 %v792_v19  ;;  %632 = vmatpush3.msra.mxu0 %v60_v18 }
  0x1a   :  { %686 = vset.pattern.permute.xlu1 %v793_v20  ;;  %712 = vperm.xlu0 %710, %v858_v12  }
  0x1b   :  { %688 = vperm.xlu1 %686, %v858_v12   ;;  %633 = vmatprep.subr.mxu0 %v59_v21 }
  0x1c   :  { %634 = vmatpush3.msra.mxu0 %v59_v21 }
  0x1d   :  { %635 = vmatprep.subr.mxu0 %v58_v22 }
  0x1e   :  { %728 = vset.pattern.permute.xlu0 %v794_v23  ;;  %636 = vmatpush3.msra.mxu0 %v58_v22 }
  0x1f   :  { %698 = vset.pattern.permute.xlu1 %v795_v24  ;;  %730 = vperm.xlu0 %728, %v858_v12  }
  0x20   :  { %700 = vperm.xlu1 %698, %v858_v12   ;;  %637 = vmatprep.subr.mxu0 %v57_v25 }
  0x21   :  { %638 = vmatpush3.msra.mxu0 %v57_v25 }
  0x23   :  { %746 = vset.pattern.permute.xlu0 %v796_v26 }
  0x24   :  { %704 = vset.pattern.permute.xlu1 %v797_v27  ;;  %748 = vperm.xlu0 %746, %v858_v12  }
  0x25   :  { %706 = vperm.xlu1 %704, %v858_v12  }
  0x28   :  { %764 = vset.pattern.permute.xlu0 %v798_v28 }
  0x29   :  { %716 = vset.pattern.permute.xlu1 %v799_v29 }
  0x2a   :  { %718 = vperm.xlu1 %716, %v858_v12  }
  0x2e   :  { %722 = vset.pattern.permute.xlu1 %v800_v30 }
  0x2f   :  { %724 = vperm.xlu1 %722, %v858_v12  }
  0x33   :  { %734 = vset.pattern.permute.xlu1 %v801_v31 }
  0x34   :  { %736 = vperm.xlu1 %734, %v858_v12  }
  0x38   :  { %740 = vset.pattern.permute.xlu1 %v802_v32 }
  0x39   :  { %742 = vperm.xlu1 %740, %v858_v12  }
  0x3d   :  { %752 = vset.pattern.permute.xlu1 %v803_v33 }
  0x3e   :  { %754 = vperm.xlu1 %752, %v858_v12  }
  0x42   :  { %758 = vset.pattern.permute.xlu1 %v798_v28 }
  0x43   :  { %760 = vperm.xlu1 %758, %v858_v12  }
  0x7d   :  { %v30_v34 = vpop.permute.xlu1 %29  ;;  %v27_v35 = vpop.permute.xlu0 %26 }
  0x7e   :  { %vm32_vm5 = vcmp.eq.s32.totalorder %v24_v37, %v30_v34  ;;  %vm31_vm6 = vcmp.eq.s32.totalorder %v24_v37, %v27_v35 }
  0x82   :  { %v38_v39 = vpop.permute.xlu1 %37  ;;  %v35_v40 = vpop.permute.xlu0 %34 }
  0x83   :  { %vm40_vm3 = vcmp.eq.s32.totalorder %v24_v37, %v38_v39  ;;  %vm39_vm4 = vcmp.eq.s32.totalorder %v24_v37, %v35_v40 }
  0x84   :  { %vm42_vm7 = vmor %vm32_vm5, %vm40_vm3 }
  0x85   :  { %vm41_vm8 = vmor %vm31_vm6, %vm39_vm4 }
  0x87   :  { %v45_v45 = vpop.permute.xlu1 %44  ;;  %v48_v46 = vpop.permute.xlu0 %47 }
  0x88   :  { %vm49_vm9 = vcmp.eq.s32.totalorder %v24_v37, %v45_v45  ;;  %vm50_vm10 = vcmp.eq.s32.totalorder %v24_v37, %v48_v46 }
  0x89   :  { %vm52_vm11 = vmor %vm42_vm7, %vm50_vm10 }
  0x8a   :  { %v600_v50 = vsel %vm52_vm11, 1.0, %v789_v7  ;;  %vm51_vm13 = vmor %vm41_vm8, %vm49_vm9 }
  0x8b   :  { %v599_v51 = vsel %vm51_vm13, 1.0, %v789_v7  ;;  %v683_v52 = vpop.permute.xlu0 %682 }
  0x8c   :  { %639 = vmatprep.mubr.msk.f32.mxu0 %vm67_vm12, %v599_v51  ;;  %v911_v53 = vunpack.i.h.bf16 %v683_v52  ;;  %v913_v54 = vunpack.i.l.bf16 %v683_v52  ;;  %v672_v55 = vpop.permute.xlu1 %671 }
  0x8d   :  { %640 = vmatmul.mubr.msk.f32.vlgmr.msra.gmra.mxu0 %vm67_vm12, %v600_v50  ;;  %v674_v57 = vunpack.i.h.bf16 %v672_v55  ;;  %v673_v58 = vunpack.i.l.bf16 %v672_v55 }
  0x8e   :  { %v231_v59 = vmul.f32 %v911_v53, %v905_v48  ;;  %v243_v60 = vmul.f32 %v911_v53, %v903_v47  ;;  %v263_v61 = vmul.f32 %v911_v53, %v907_v49  ;;  %v230_v62 = vmul.f32 %v913_v54, %v905_v48 }
  0x8f   :  { %v262_v63 = vmul.f32 %v913_v54, %v907_v49  ;;  %v187_v0 = vmul.f32 %v674_v57, %v903_v47  ;;  %v215_v1 = vmul.f32 %v674_v57, %v907_v49  ;;  %v242_v3 = vmul.f32 %v913_v54, %v903_v47 }
  0x90   :  { %v265_v2 = vadd.f32 %v918_v56, %v263_v61  ;;  %v186_v4 = vmul.f32 %v673_v58, %v903_v47  ;;  %v214_v5 = vmul.f32 %v673_v58, %v907_v49  ;;  %v695_v6 = vpop.permute.xlu0 %694 }
  0x91   :  { %v264_v7 = vadd.f32 %v918_v56, %v262_v63  ;;  %v189_v8 = vadd.f32 %v918_v56, %v187_v0  ;;  %v217_v9 = vadd.f32 %v918_v56, %v215_v1  ;;  %v678_v10 = vpop.permute.xlu1 %677  ;;  %v940_v11 = vunpack.i.h.bf16 %v695_v6 }
  0x92   :  { %v188_v12 = vadd.f32 %v918_v56, %v186_v4  ;;  %v216_v13 = vadd.f32 %v918_v56, %v214_v5  ;;  %v680_v14 = vunpack.i.h.bf16 %v678_v10  ;;  %v679_v15 = vunpack.i.l.bf16 %v678_v10 }
  0x93   :  { %v279_v16 = vmul.f32 %v940_v11, %v905_v48  ;;  %v291_v17 = vmul.f32 %v940_v11, %v903_v47  ;;  %v311_v18 = vmul.f32 %v940_v11, %v907_v49  ;;  %v950_v19 = vunpack.i.l.bf16 %v695_v6 }
  0x94   :  { %v203_v20 = vmul.f32 %v680_v14, %v905_v48  ;;  %v219_v21 = vmul.f32 %v680_v14, %v903_v47  ;;  %v239_v22 = vmul.f32 %v680_v14, %v907_v49  ;;  %v202_v23 = vmul.f32 %v679_v15, %v905_v48 }
  0x95   :  { %v218_v24 = vmul.f32 %v679_v15, %v903_v47  ;;  %v238_v25 = vmul.f32 %v679_v15, %v907_v49  ;;  %v313_v26 = vadd.f32 %v918_v56, %v311_v18  ;;  %v278_v27 = vmul.f32 %v950_v19, %v905_v48 }
  0x96   :  { %v241_v28 = vadd.f32 %v918_v56, %v239_v22  ;;  %v204_v29 = vadd.f32 %v202_v23, %v188_v12  ;;  %v205_v30 = vadd.f32 %v203_v20, %v189_v8  ;;  %v221_v31 = vadd.f32 %v219_v21, %v217_v9  ;;  %v689_v32 = vpop.permute.xlu1 %688 }
  0x97   :  { %v220_v33 = vadd.f32 %v218_v24, %v216_v13  ;;  %v240_v34 = vadd.f32 %v918_v56, %v238_v25  ;;  %v691_v35 = vunpack.i.h.bf16 %v689_v32  ;;  %v690_v36 = vunpack.i.l.bf16 %v689_v32 }
  0x98   :  { %v206_v37 = vmul.f32 %v673_v58, %v204_v29  ;;  %v207_v38 = vmul.f32 %v674_v57, %v205_v30  ;;  %v233_v39 = vadd.f32 %v231_v59, %v221_v31  ;;  %v245_v40 = vadd.f32 %v243_v60, %v241_v28 }
  0x99   :  { %v232_v41 = vadd.f32 %v230_v62, %v220_v33  ;;  %v255_v42 = vmul.f32 %v691_v35, %v905_v48  ;;  %v267_v43 = vmul.f32 %v691_v35, %v903_v47  ;;  %v287_v44 = vmul.f32 %v691_v35, %v907_v49 }
  0x9a   :  { %v208_v45 = vmax.f32 %v206_v37, 0.0  ;;  %v209_v46 = vmax.f32 %v207_v38, 0.0  ;;  %v235_v50 = vmul.f32 %v680_v14, %v233_v39  ;;  %v244_v51 = vadd.f32 %v242_v3, %v240_v34 }
  0x9b   :  { %v234_v52 = vmul.f32 %v679_v15, %v232_v41  ;;  %v289_v55 = vadd.f32 %v918_v56, %v287_v44  ;;  %v254_v61 = vmul.f32 %v690_v36, %v905_v48  ;;  %v257_v58 = vadd.f32 %v255_v42, %v245_v40  ;;  %v701_v57 = vpop.permute.xlu1 %700  ;;  %v713_v42 = vpop.permute.xlu0 %712 }
  0x9c   :  { %v237_v59 = vmax.f32 %v209_v46, %v235_v50  ;;  %v266_v60 = vmul.f32 %v690_v36, %v903_v47  ;;  %v269_v62 = vadd.f32 %v267_v43, %v265_v2  ;;  %v286_v63 = vmul.f32 %v690_v36, %v907_v49 }
  0x9d   :  { %v236_v0 = vmax.f32 %v208_v45, %v234_v52  ;;  %v256_v1 = vadd.f32 %v254_v61, %v244_v51  ;;  %v259_v4 = vmul.f32 %v911_v53, %v257_v58  ;;  %v293_v5 = vadd.f32 %v291_v17, %v289_v55 }
  0x9e   :  { %v268_v6 = vadd.f32 %v266_v60, %v264_v7  ;;  %v288_v3 = vadd.f32 %v918_v56, %v286_v63  ;;  %v281_v8 = vadd.f32 %v279_v16, %v269_v62  ;;  %v290_v9 = vmul.f32 %v950_v19, %v903_v47 }
  0x9f   :  { %v258_v10 = vmul.f32 %v913_v54, %v256_v1  ;;  %v261_v12 = vmax.f32 %v237_v59, %v259_v4  ;;  %v310_v2 = vmul.f32 %v950_v19, %v907_v49  ;;  %v703_v13 = vunpack.i.h.bf16 %v701_v57 }
  0xa0   :  { %v280_v14 = vadd.f32 %v278_v27, %v268_v6  ;;  %v283_v15 = vmul.f32 %v691_v35, %v281_v8  ;;  %v292_v18 = vadd.f32 %v290_v9, %v288_v3  ;;  %v702_v20 = vunpack.i.l.bf16 %v701_v57  ;;  %v707_v53 = vpop.permute.xlu1 %706 }
  0xa1   :  { %v260_v17 = vmax.f32 %v236_v0, %v258_v10  ;;  %v312_v7 = vadd.f32 %v918_v56, %v310_v2  ;;  %v303_v16 = vmul.f32 %v703_v13, %v905_v48  ;;  %v315_v21 = vmul.f32 %v703_v13, %v903_v47 }
  0xa2   :  { %v282_v22 = vmul.f32 %v690_v36, %v280_v14  ;;  %v285_v23 = vmax.f32 %v261_v12, %v283_v15  ;;  %v335_v54 = vmul.f32 %v703_v13, %v907_v49  ;;  %v302_v24 = vmul.f32 %v702_v20, %v905_v48 }
  0xa3   :  { %v305_v25 = vadd.f32 %v303_v16, %v293_v5  ;;  %v314_v27 = vmul.f32 %v702_v20, %v903_v47  ;;  %v317_v28 = vadd.f32 %v315_v21, %v313_v26  ;;  %v334_v29 = vmul.f32 %v702_v20, %v907_v49 }
  0xa4   :  { %v284_v30 = vmax.f32 %v260_v17, %v282_v22  ;;  %v337_v31 = vadd.f32 %v918_v56, %v335_v54  ;;  %v304_v32 = vadd.f32 %v302_v24, %v292_v18  ;;  %v709_v33 = vunpack.i.h.bf16 %v707_v53  ;;  %v731_v24 = vpop.permute.xlu0 %730 }
  0xa5   :  { %v307_v34 = vmul.f32 %v940_v11, %v305_v25  ;;  %v316_v35 = vadd.f32 %v314_v27, %v312_v7  ;;  %v336_v36 = vadd.f32 %v918_v56, %v334_v29  ;;  %v708_v37 = vunpack.i.l.bf16 %v707_v53  ;;  %v719_v38 = vpop.permute.xlu1 %718 }
  0xa6   :  { %v306_v39 = vmul.f32 %v950_v19, %v304_v32  ;;  %v327_v40 = vmul.f32 %v709_v33, %v905_v48  ;;  %v339_v26 = vmul.f32 %v709_v33, %v903_v47  ;;  %v359_v41 = vmul.f32 %v709_v33, %v907_v49 }
  0xa7   :  { %v309_v43 = vmax.f32 %v285_v23, %v307_v34  ;;  %v326_v44 = vmul.f32 %v708_v37, %v905_v48  ;;  %v338_v45 = vmul.f32 %v708_v37, %v903_v47  ;;  %v358_v11 = vmul.f32 %v708_v37, %v907_v49 }
  0xa8   :  { %v308_v46 = vmax.f32 %v284_v30, %v306_v39  ;;  %v361_v50 = vadd.f32 %v918_v56, %v359_v41  ;;  %v329_v51 = vadd.f32 %v327_v40, %v317_v28  ;;  %v341_v52 = vadd.f32 %v339_v26, %v337_v31 }
  0xa9   :  { %v328_v19 = vadd.f32 %v326_v44, %v316_v35  ;;  %v340_v55 = vadd.f32 %v338_v45, %v336_v36  ;;  %v360_v61 = vadd.f32 %v918_v56, %v358_v11  ;;  %v715_v58 = vunpack.i.h.bf16 %v713_v42 }
  0xaa   :  { %v331_v57 = vmul.f32 %v703_v13, %v329_v51  ;;  %v714_v59 = vunpack.i.l.bf16 %v713_v42  ;;  %v721_v60 = vunpack.i.h.bf16 %v719_v38  ;;  %v996_v62 = vunpack.i.l.bf16 %v719_v38  ;;  %v725_v5 = vpop.permute.xlu1 %724 }
  0xab   :  { %v330_v63 = vmul.f32 %v702_v20, %v328_v19  ;;  %v351_v0 = vmul.f32 %v715_v58, %v905_v48  ;;  %v363_v1 = vmul.f32 %v715_v58, %v903_v47  ;;  %v383_v4 = vmul.f32 %v715_v58, %v907_v49 }
  0xac   :  { %v333_v6 = vmax.f32 %v309_v43, %v331_v57  ;;  %v350_v3 = vmul.f32 %v714_v59, %v905_v48  ;;  %v362_v8 = vmul.f32 %v714_v59, %v903_v47  ;;  %v382_v9 = vmul.f32 %v714_v59, %v907_v49 }
  0xad   :  { %v332_v10 = vmax.f32 %v308_v46, %v330_v63  ;;  %v353_v12 = vadd.f32 %v351_v0, %v341_v52  ;;  %v365_v2 = vadd.f32 %v363_v1, %v361_v50  ;;  %v385_v13 = vadd.f32 %v918_v56, %v383_v4 }
  0xae   :  { %v352_v14 = vadd.f32 %v350_v3, %v340_v55  ;;  %v364_v15 = vadd.f32 %v362_v8, %v360_v61  ;;  %v384_v18 = vadd.f32 %v918_v56, %v382_v9  ;;  %v375_v20 = vmul.f32 %v721_v60, %v905_v48 }
  0xaf   :  { %v355_v53 = vmul.f32 %v709_v33, %v353_v12  ;;  %v387_v17 = vmul.f32 %v721_v60, %v903_v47  ;;  %v407_v7 = vmul.f32 %v721_v60, %v907_v49  ;;  %v374_v16 = vmul.f32 %v996_v62, %v905_v48  ;;  %v737_v30 = vpop.permute.xlu1 %736 }
  0xb0   :  { %v354_v21 = vmul.f32 %v708_v37, %v352_v14  ;;  %v377_v22 = vadd.f32 %v375_v20, %v365_v2  ;;  %v386_v23 = vmul.f32 %v996_v62, %v903_v47  ;;  %v406_v54 = vmul.f32 %v996_v62, %v907_v49 }
  0xb1   :  { %v357_v25 = vmax.f32 %v333_v6, %v355_v53  ;;  %v409_v27 = vadd.f32 %v918_v56, %v407_v7  ;;  %v376_v28 = vadd.f32 %v374_v16, %v364_v15  ;;  %v389_v29 = vadd.f32 %v387_v17, %v385_v13 }
  0xb2   :  { %v356_v31 = vmax.f32 %v332_v10, %v354_v21  ;;  %v379_v32 = vmul.f32 %v715_v58, %v377_v22  ;;  %v388_v33 = vadd.f32 %v386_v23, %v384_v18  ;;  %v408_v34 = vadd.f32 %v918_v56, %v406_v54 }
  0xb3   :  { %v378_v35 = vmul.f32 %v714_v59, %v376_v28  ;;  %v727_v36 = vunpack.i.h.bf16 %v725_v5  ;;  %v726_v37 = vunpack.i.l.bf16 %v725_v5  ;;  %v733_v38 = vunpack.i.h.bf16 %v731_v24 }
  0xb4   :  { %v381_v39 = vmax.f32 %v357_v25, %v379_v32  ;;  %v732_v40 = vunpack.i.l.bf16 %v731_v24  ;;  %v1017_v26 = vunpack.i.h.bf16 %v737_v30  ;;  %v1019_v41 = vunpack.i.l.bf16 %v737_v30 }
  0xb5   :  { %v380_v42 = vmax.f32 %v356_v31, %v378_v35  ;;  %v399_v43 = vmul.f32 %v727_v36, %v905_v48  ;;  %v411_v44 = vmul.f32 %v727_v36, %v903_v47  ;;  %v431_v45 = vmul.f32 %v727_v36, %v907_v49 }
  0xb6   :  { %v398_v11 = vmul.f32 %v726_v37, %v905_v48  ;;  %v410_v46 = vmul.f32 %v726_v37, %v903_v47  ;;  %v430_v50 = vmul.f32 %v726_v37, %v907_v49  ;;  %v423_v51 = vmul.f32 %v733_v38, %v905_v48 }
  0xb7   :  { %v433_v52 = vadd.f32 %v918_v56, %v431_v45  ;;  %v401_v19 = vadd.f32 %v399_v43, %v389_v29  ;;  %v413_v55 = vadd.f32 %v411_v44, %v409_v27  ;;  %v435_v61 = vmul.f32 %v733_v38, %v903_v47 }
  0xb8   :  { %v400_v58 = vadd.f32 %v398_v11, %v388_v33  ;;  %v412_v57 = vadd.f32 %v410_v46, %v408_v34  ;;  %v432_v59 = vadd.f32 %v918_v56, %v430_v50  ;;  %v455_v63 = vmul.f32 %v733_v38, %v907_v49 }
  0xb9   :  { %v403_v0 = vmul.f32 %v721_v60, %v401_v19  ;;  %v425_v1 = vadd.f32 %v423_v51, %v413_v55  ;;  %v437_v4 = vadd.f32 %v435_v61, %v433_v52  ;;  %v422_v5 = vmul.f32 %v732_v40, %v905_v48 }
  0xba   :  { %v402_v6 = vmul.f32 %v996_v62, %v400_v58  ;;  %v457_v3 = vadd.f32 %v918_v56, %v455_v63  ;;  %v434_v8 = vmul.f32 %v732_v40, %v903_v47  ;;  %v454_v9 = vmul.f32 %v732_v40, %v907_v49  ;;  %v743_v62 = vpop.permute.xlu1 %742 }
  0xbb   :  { %v405_v10 = vmax.f32 %v381_v39, %v403_v0  ;;  %v427_v12 = vmul.f32 %v727_v36, %v425_v1  ;;  %v424_v2 = vadd.f32 %v422_v5, %v412_v57  ;;  %v447_v13 = vmul.f32 %v1017_v26, %v905_v48  ;;  %v749_v36 = vpop.permute.xlu0 %748 }
  0xbc   :  { %v404_v14 = vmax.f32 %v380_v42, %v402_v6  ;;  %v436_v60 = vadd.f32 %v434_v8, %v432_v59  ;;  %v456_v15 = vadd.f32 %v918_v56, %v454_v9  ;;  %v459_v18 = vmul.f32 %v1017_v26, %v903_v47 }
  0xbd   :  { %v426_v20 = vmul.f32 %v726_v37, %v424_v2  ;;  %v429_v53 = vmax.f32 %v405_v10, %v427_v12  ;;  %v479_v17 = vmul.f32 %v1017_v26, %v907_v49  ;;  %v446_v7 = vmul.f32 %v1019_v41, %v905_v48 }
  0xbe   :  { %v449_v16 = vadd.f32 %v447_v13, %v437_v4  ;;  %v458_v21 = vmul.f32 %v1019_v41, %v903_v47  ;;  %v461_v22 = vadd.f32 %v459_v18, %v457_v3  ;;  %v478_v23 = vmul.f32 %v1019_v41, %v907_v49 }
  0xbf   :  { %v428_v54 = vmax.f32 %v404_v14, %v426_v20  ;;  %v481_v24 = vadd.f32 %v918_v56, %v479_v17  ;;  %v448_v25 = vadd.f32 %v446_v7, %v436_v60  ;;  %v745_v27 = vunpack.i.h.bf16 %v743_v62 }
  0xc0   :  { %v451_v28 = vmul.f32 %v733_v38, %v449_v16  ;;  %v460_v29 = vadd.f32 %v458_v21, %v456_v15  ;;  %v480_v30 = vadd.f32 %v918_v56, %v478_v23  ;;  %v744_v31 = vunpack.i.l.bf16 %v743_v62  ;;  %v755_v38 = vpop.permute.xlu1 %754 }
  0xc1   :  { %v450_v32 = vmul.f32 %v732_v40, %v448_v25  ;;  %v471_v33 = vmul.f32 %v745_v27, %v905_v48  ;;  %v483_v34 = vmul.f32 %v745_v27, %v903_v47  ;;  %v503_v35 = vmul.f32 %v745_v27, %v907_v49 }
  0xc2   :  { %v453_v37 = vmax.f32 %v429_v53, %v451_v28  ;;  %v470_v39 = vmul.f32 %v744_v31, %v905_v48  ;;  %v482_v42 = vmul.f32 %v744_v31, %v903_v47  ;;  %v502_v43 = vmul.f32 %v744_v31, %v907_v49 }
  0xc3   :  { %v452_v44 = vmax.f32 %v428_v54, %v450_v32  ;;  %v505_v45 = vadd.f32 %v918_v56, %v503_v35  ;;  %v473_v11 = vadd.f32 %v471_v33, %v461_v22  ;;  %v485_v40 = vadd.f32 %v483_v34, %v481_v24 }
  0xc4   :  { %v472_v46 = vadd.f32 %v470_v39, %v460_v29  ;;  %v484_v50 = vadd.f32 %v482_v42, %v480_v30  ;;  %v504_v51 = vadd.f32 %v918_v56, %v502_v43  ;;  %v751_v52 = vunpack.i.h.bf16 %v749_v36  ;;  %v761_v13 = vpop.permute.xlu1 %760 }
  0xc5   :  { %v475_v19 = vmul.f32 %v1017_v26, %v473_v11  ;;  %v750_v55 = vunpack.i.l.bf16 %v749_v36  ;;  %v757_v61 = vunpack.i.h.bf16 %v755_v38  ;;  %v756_v58 = vunpack.i.l.bf16 %v755_v38 }
  0xc6   :  { %v474_v57 = vmul.f32 %v1019_v41, %v472_v46  ;;  %v495_v59 = vmul.f32 %v751_v52, %v905_v48  ;;  %v507_v63 = vmul.f32 %v751_v52, %v903_v47  ;;  %v527_v0 = vmul.f32 %v751_v52, %v907_v49 }
  0xc7   :  { %v477_v1 = vmax.f32 %v453_v37, %v475_v19  ;;  %v494_v4 = vmul.f32 %v750_v55, %v905_v48  ;;  %v506_v5 = vmul.f32 %v750_v55, %v903_v47  ;;  %v526_v6 = vmul.f32 %v750_v55, %v907_v49 }
  0xc8   :  { %v476_v3 = vmax.f32 %v452_v44, %v474_v57  ;;  %v497_v26 = vadd.f32 %v495_v59, %v485_v40  ;;  %v509_v8 = vadd.f32 %v507_v63, %v505_v45  ;;  %v529_v9 = vadd.f32 %v918_v56, %v527_v0 }
  0xc9   :  { %v496_v10 = vadd.f32 %v494_v4, %v484_v50  ;;  %v508_v41 = vadd.f32 %v506_v5, %v504_v51  ;;  %v528_v12 = vadd.f32 %v918_v56, %v526_v6  ;;  %v519_v2 = vmul.f32 %v757_v61, %v905_v48 }
  0xca   :  { %v499_v14 = vmul.f32 %v745_v27, %v497_v26  ;;  %v531_v60 = vmul.f32 %v757_v61, %v903_v47  ;;  %v551_v15 = vmul.f32 %v757_v61, %v907_v49  ;;  %v518_v18 = vmul.f32 %v756_v58, %v905_v48 }
  0xcb   :  { %v498_v62 = vmul.f32 %v744_v31, %v496_v10  ;;  %v521_v20 = vadd.f32 %v519_v2, %v509_v8  ;;  %v530_v53 = vmul.f32 %v756_v58, %v903_v47  ;;  %v550_v17 = vmul.f32 %v756_v58, %v907_v49 }
  0xcc   :  { %v553_v7 = vadd.f32 %v918_v56, %v551_v15  ;;  %v520_v16 = vadd.f32 %v518_v18, %v508_v41  ;;  %v533_v21 = vadd.f32 %v531_v60, %v529_v9  ;;  %v763_v22 = vunpack.i.h.bf16 %v761_v13 }
  0xcd   :  { %v532_v23 = vadd.f32 %v530_v53, %v528_v12  ;;  %v552_v54 = vadd.f32 %v918_v56, %v550_v17  ;;  %v762_v24 = vunpack.i.l.bf16 %v761_v13  ;;  %v523_v25 = vmul.f32 %v751_v52, %v521_v20 }
  0xce   :  { %v543_v27 = vmul.f32 %v763_v22, %v905_v48  ;;  %v555_v28 = vmul.f32 %v763_v22, %v903_v47  ;;  %v522_v29 = vmul.f32 %v750_v55, %v520_v16  ;;  %v501_v32 = vmax.f32 %v477_v1, %v499_v14 }
  0xcf   :  { %v542_v30 = vmul.f32 %v762_v24, %v905_v48  ;;  %v554_v31 = vmul.f32 %v762_v24, %v903_v47  ;;  %v563_v33 = vmul.f32 %v763_v22, %v907_v49  ;;  %v500_v36 = vmax.f32 %v476_v3, %v498_v62 }
  0xd0   :  { %v545_v34 = vadd.f32 %v543_v27, %v533_v21  ;;  %v557_v35 = vadd.f32 %v555_v28, %v553_v7  ;;  %v562_v42 = vmul.f32 %v762_v24, %v907_v49  ;;  %v525_v38 = vmax.f32 %v501_v32, %v523_v25 }
  0xd1   :  { %v544_v37 = vadd.f32 %v542_v30, %v532_v23  ;;  %v556_v39 = vadd.f32 %v554_v31, %v552_v54  ;;  %v524_v11 = vmax.f32 %v500_v36, %v522_v29  ;;  %v565_v48 = vadd.f32 %v918_v56, %v563_v33 }
  0xd2   :  { %v559_v43 = vmul.f32 %v763_v22, %v557_v35  ;;  %v547_v44 = vmul.f32 %v757_v61, %v545_v34  ;;  %v564_v50 = vadd.f32 %v918_v56, %v562_v42 }
  0xd3   :  { %v558_v45 = vmul.f32 %v762_v24, %v556_v39  ;;  %v546_v40 = vmul.f32 %v756_v58, %v544_v37 }
  0xd4   :  { %v549_v46 = vmax.f32 %v525_v38, %v547_v44 }
  0xd5   :  { %v548_v47 = vmax.f32 %v524_v11, %v546_v40 }
  0xd6   :  { %v561_v51 = vmax.f32 %v549_v46, %v559_v43 }
  0xd7   :  { %v560_v52 = vmax.f32 %v548_v47, %v558_v45 }
  0xd8   :  { %v567_v19 = vmax.f32 %v561_v51, %v565_v48 }
  0xd9   :  { %v566_v55 = vmax.f32 %v560_v52, %v564_v50 }
  0xda   :  { %v569_v57 = vmax.f32 %v567_v19, %v918_v56 }
  0xdb   :  { %v568_v49 = vmax.f32 %v566_v55, %v918_v56 }
  0xdc   :  { %v571_v59 = vmax.f32 %v569_v57, 0.0 }
  0xdd   :  { %v570_v63 = vmax.f32 %v568_v49, 0.0 }
  0xde   :  { %576 = vrot.lane.b32.xlu1 %v571_v59, %s804_s4 }
  0xdf   :  { %574 = vrot.lane.b32.xlu0 %v570_v63, %s804_s4 }
 0x14d   :  { %v641_v61 = vpop.f32.mrf.mxu0 }
 0x14e   :  { %155 = vst.msk [vmem:[#allocation2 + $0x8] sm:$0xff] %vm153_vm14, %v641_v61 }
 0x14f   :  { %v144_v58 = vpop.f32.mrf.mxu0 }
 0x150   :  { %v577_v0 = vpop.permute.xlu1 %576  ;;  %154 = vst.msk [vmem:[#allocation2] sm:$0xff] %vm153_vm14, %v144_v58 }
 0x151   :  { %v575_v1 = vpop.permute.xlu0 %574  ;;  %582 = vst.msk [vmem:[#allocation2 + $0x8] sm:$0xff] %vm580_vm15, %v577_v0 }
 0x152   :  { %581 = vst.msk [vmem:[#allocation2] sm:$0xff] %vm580_vm15, %v575_v1 }
 0x153   :  { %776 = shalt.err (!%p773_p4)
}
 0x154   :  { %s806_s24 = smov 128   ;;  %s807_s25 = smov 8  }
 0x155   :  { %594 = dma.vmem_to_hbm [thread:$0]  %s589_s22, 256, %s1096_s5, [#allocation3], %s806_s24, %s806_s24, %s807_s25  }
 0x156   :  { %785 = dma.done.wait [#allocation3], 256  }
 0x157   :  { %786 = vsyncadd [#allocation3], 4294967040 }
 0x158   :  { %598 = vsyncpa [#allocation3], 1 }

</bundles_post_ra>
